<compile_context>
chip_gen: v5e
topology: v5e:2x2
jax: 0.10.0
libtpu: 0.0.40
codegen_flags: <defaults>
</compile_context>

<pallas_src>
import functools

import jax
import jax.numpy as jnp
from jax.experimental import pallas as pl
from jax.experimental.pallas import tpu as pltpu


def _loss_flow_kernel(x_ref, out_ref, carry_ref, *, H, tr, tiles_per_slice, w2):
    """One (tr, 2W) row tile of the interleaved flow field.

    x_ref:     (tr, 2W)   input tile (original dtype; cast to f32 in-kernel)
    out_ref:   (1, 8, 2W) f32 per-slice partial column sums (resident accumulator)
    carry_ref: (1, 2W)    f32 scratch: previous tile's last row (row-seam)
    """
    s = pl.program_id(0)               # slice (parallel; megacore split on v7x)
    j = pl.program_id(1)               # row tile within the slice (arbitrary)
    t = s * tiles_per_slice + j        # logical row-tile index
    row0 = t * tr                      # global row index of local row 0

    @pl.when(j == 0)
    def _init():
        out_ref[...] = jnp.zeros_like(out_ref)

    x = x_ref[...].astype(jnp.float32)                 # (tr, 2W)
    # lane left-shift by 2  ->  xs[r, l] = x[r, l + 2]  (u and v lanes at once)
    xs = pltpu.roll(x, shift=w2 - 2, axis=1)
    # sublane up-shift by 1 ->  xn[r, l] = x[r + 1, l + 2]
    xn = pltpu.roll(xs, shift=tr - 1, axis=0)

    # Pair (row0 + r, row0 + r + 1) is valid iff r <= tr - 2 and row0 + r <= H - 3.
    # (The global bound only binds on the last real tile; padded rows of a ragged
    #  block may hold junk, so we SELECT before squaring.)
    rmax = jnp.minimum(tr - 1, H - 2 - row0)
    rows = jax.lax.broadcasted_iota(jnp.int32, (tr, 1), 0)
    d = jnp.where(rows < rmax, xn - x, 0.0)
    dsq = d * d

    # Per-lane column sums, kept as 8 sublanes: the reshape+sum is pure VPU
    # vreg adds; garbage in the 4 rightmost lanes is finite and discarded in
    # the epilogue.  Cross-sublane reduce happens once, outside the kernel.
    out_ref[...] += jnp.sum(dsq.reshape(tr // 8, 8, w2), axis=0)[None]

    # Seam pair (row0 - 1, row0): previous tile's last row vs this tile's first.
    @pl.when((j > 0) & (row0 < H - 1))
    def _seam():
        ds = xs[0:1, :] - carry_ref[...]
        out_ref[0:1, 0:1, :] += (ds * ds)[None]

    # Save this tile's last row for the next tile's seam.
    carry_ref[...] = x[tr - 1:tr, :]


def _round_up8(n):
    return ((n + 7) // 8) * 8


def loss_flow(f):
    """f: (1, H, W, 2) flow field -> scalar float32 (matches the PyTorch module)."""
    _, H, W, _ = f.shape
    if H < 3 or W < 3:                       # empty conv output -> loss is 0
        return jnp.float32(0.0)
    w2 = 2 * W
    # Free contiguous reshape: x2d[h, 2*w + c] = f[0, h, w, c].  No cast here.
    x2d = f.reshape(H, w2)
    itemsize = jnp.dtype(f.dtype).itemsize

    # ---- per-generation VMEM-aware tile sizing --------------------------------
    try:
        vmem_cap = int(pltpu.get_tpu_info().vmem_capacity_bytes)
    except Exception:
        vmem_cap = 64 * 1024 * 1024          # conservative fallback (v7x physical)
    # One input block; leave room for double buffering + a few f32 temporaries.
    block_budget = max(1 << 20, vmem_cap // 10)
    tr_cap = max(8, (block_budget // (w2 * 4)) // 8 * 8)

    if H < 16:
        n_slices, tr, tiles_per_slice = 1, _round_up8(H), 1
    else:
        n_slices = 2                         # row split across v7x's two TCs
        rows_per_slice = -(-H // n_slices)
        tr = min(tr_cap, _round_up8(rows_per_slice))
        tiles_per_slice = -(-rows_per_slice // tr)
    n_real = -(-H // tr)                     # number of row tiles with real rows

    kernel = functools.partial(_loss_flow_kernel, H=H, tr=tr,
                               tiles_per_slice=tiles_per_slice, w2=w2)
    vmem_limit = int(min(0.9 * vmem_cap, 128 * 1024 * 1024))

    partials = pl.pallas_call(
        kernel,
        grid=(n_slices, tiles_per_slice),
        in_specs=[pl.BlockSpec(
            (tr, w2),
            # Clamp so trailing fully-padded tiles of a slice re-read the last
            # real block instead of indexing past the array; their rows are all
            # masked out by the rmax test in the kernel.
            lambda s, j: (jnp.minimum(s * tiles_per_slice + j, n_real - 1), 0))],
        out_specs=pl.BlockSpec((1, 8, w2), lambda s, j: (s, 0, 0)),
        out_shape=jax.ShapeDtypeStruct((n_slices, 8, w2), jnp.float32),
        scratch_shapes=[pltpu.VMEM((1, w2), jnp.float32)],   # row-seam carry
        compiler_params=pltpu.CompilerParams(
            dimension_semantics=("parallel", "arbitrary"),
            vmem_limit_bytes=vmem_limit,
        ),
        cost_estimate=pl.CostEstimate(
            flops=4 * H * w2,
            transcendentals=W,
            bytes_accessed=H * w2 * itemsize + n_slices * 8 * w2 * 4,
        ),
    )(x2d)

    # ---- tiny O(W) epilogue in plain XLA ---------------------------------------
    csum = jnp.sum(partials, axis=(0, 1))                        # (2W,)
    # Row pair straddling each slice boundary (skipped by both slices in-kernel).
    for si in range(1, n_slices):
        y = si * tiles_per_slice * tr - 1
        if 0 <= y <= H - 3:                                      # static check
            top = x2d[y, : w2 - 4].astype(jnp.float32)
            bot = x2d[y + 1, 2: w2 - 2].astype(jnp.float32)
            csum = csum.at[: w2 - 4].add((bot - top) ** 2)
    # Pair interleaved u/v lanes, keep conv-output columns 0..W-3, sqrt, reduce.
    col = csum[0: w2 - 4: 2] + csum[1: w2 - 4: 2]                # (W-2,)
    return jnp.sum(jnp.sqrt(col))


def loss_flow_ref(f):
    """Pure-JAX reference mirroring the literal PyTorch semantics."""
    u = f[0, :, :, 0].astype(jnp.float32)
    v = f[0, :, :, 1].astype(jnp.float32)
    du = u[1:-1, 1:-1] - u[0:-2, 0:-2]       # filter 0: centre - neighbour(0, 0)
    dv = v[1:-1, 1:-1] - v[0:-2, 0:-2]
    dist = jnp.sqrt(jnp.sum(du * du + dv * dv, axis=0))
    return jnp.sum(dist)


if __name__ == "__main__":
    key = jax.random.PRNGKey(0)
    keys = jax.random.split(key, 3)
    # (1) two slices, full tiles, cross-slice seam; (2) ragged last tile;
    # (3) tiny H (single slice, block taller than the array, padded rows masked).
    cases = [(1, 64, 64, 2), (1, 50, 64, 2), (1, 12, 64, 2)]
    for shape, k in zip(cases, keys):
        f = jax.random.normal(k, shape, dtype=jnp.float32)
        out = loss_flow(f)
        jax.block_until_ready(out)
        ref = loss_flow_ref(f)
        assert jnp.allclose(out, ref, rtol=2e-4, atol=1e-3), (shape, float(out), float(ref))
    print("KERNEL_OK")
</pallas_src>

<mosaic_0001>
module attributes {stable_mosaic.version = 11 : i64} {
  func.func @_loss_flow_kernel(%arg0: i32, %arg1: i32, %arg2: memref<32x128xf32, #tpu.memory_space<vmem>>, %arg3: memref<1x8x128xf32, #tpu.memory_space<vmem>>, %arg4: memref<1x128xf32, #tpu.memory_space<vmem>>) attributes {dimension_semantics = [#tpu.dimension_semantics<parallel>, #tpu.dimension_semantics<arbitrary>], iteration_bounds = array<i64: 2, 1>, scalar_prefetch = 0 : i64, scratch_operands = 1 : i64, tpu.core_type = #tpu.core_type<tc>, window_params = [{transform_indices = @transform_0, window_bounds = array<i64: 32, 128>}, {transform_indices = @transform_1, window_bounds = array<i64: 1, 8, 128>}]} {
    %c1_i32 = arith.constant 1 : i32
    %0 = arith.muli %arg0, %c1_i32 : i32
    %1 = arith.addi %0, %arg1 : i32
    %c32_i32 = arith.constant 32 : i32
    %2 = arith.muli %1, %c32_i32 : i32
    %c0_i32 = arith.constant 0 : i32
    %3 = arith.cmpi eq, %arg1, %c0_i32 : i32
    %4 = arith.extui %3 : i1 to i32
    %c0_i32_0 = arith.constant 0 : i32
    %5 = arith.cmpi ne, %4, %c0_i32_0 : i32
    scf.if %5 {
      %cst_14 = arith.constant 0.000000e+00 : f32
      %33 = vector.broadcast %cst_14 : f32 to vector<1x8x128xf32>
      %c0_15 = arith.constant 0 : index
      %c0_16 = arith.constant 0 : index
      %c0_17 = arith.constant 0 : index
      %34 = vector.load %arg3[%c0_15, %c0_16, %c0_17] : memref<1x8x128xf32, #tpu.memory_space<vmem>>, vector<1x8x128xf32>
      tpu.vector_store %arg3[%c0_15, %c0_16, %c0_17], %33 {strides = array<i32>} : memref<1x8x128xf32, #tpu.memory_space<vmem>>, vector<1x8x128xf32>,
    } else {
    }
    %c0 = arith.constant 0 : index
    %c0_1 = arith.constant 0 : index
    %6 = vector.load %arg2[%c0, %c0_1] : memref<32x128xf32, #tpu.memory_space<vmem>>, vector<32x128xf32>
    %c126_i32 = arith.constant 126 : i32
    %7 = tpu.dynamic_rotate %6 by %c126_i32 dim 1 : vector<32x128xf32>, i32 -> vector<32x128xf32>
    %c31_i32 = arith.constant 31 : i32
    %8 = tpu.dynamic_rotate %7 by %c31_i32 dim 0 : vector<32x128xf32>, i32 -> vector<32x128xf32>
    %c62_i32 = arith.constant 62 : i32
    %9 = arith.subi %c62_i32, %2 : i32
    %c31_i32_2 = arith.constant 31 : i32
    %10 = arith.minsi %c31_i32_2, %9 : i32
    %11 = tpu.iota {dimensions = array<i32: 0>} : vector<32x1xi32>
    %12 = vector.broadcast %10 : i32 to vector<32x1xi32>
    %13 = arith.cmpi slt, %11, %12 : vector<32x1xi32>
    %14 = arith.subf %8, %6 : vector<32x128xf32>
    %cst = arith.constant 0.000000e+00 : f32
    %15 = vector.shape_cast %13 : vector<32x1xi1> to vector<32x1xi1>
    %16 = vector.broadcast %15 : vector<32x1xi1> to vector<32x128xi1>
    %17 = vector.broadcast %cst : f32 to vector<32x128xf32>
    %18 = arith.select %16, %14, %17 : vector<32x128xi1>, vector<32x128xf32>
    %19 = arith.mulf %18, %18 : vector<32x128xf32>
    %c0_3 = arith.constant 0 : index
    %c0_4 = arith.constant 0 : index
    %c0_5 = arith.constant 0 : index
    %20 = vector.load %arg3[%c0_3, %c0_4, %c0_5] : memref<1x8x128xf32, #tpu.memory_space<vmem>>, vector<1x8x128xf32>
    %21 = vector.shape_cast %19 : vector<32x128xf32> to vector<4x8x128xf32>
    %cst_6 = arith.constant dense<0.000000e+00> : vector<8x128xf32>
    %22 = vector.multi_reduction <add>, %21, %cst_6 [0] : vector<4x8x128xf32> to vector<8x128xf32>
    %23 = vector.shape_cast %22 : vector<8x128xf32> to vector<1x8x128xf32>
    %24 = arith.addf %20, %23 : vector<1x8x128xf32>
    %c0_7 = arith.constant 0 : index
    %c0_8 = arith.constant 0 : index
    %c0_9 = arith.constant 0 : index
    %25 = vector.load %arg3[%c0_7, %c0_8, %c0_9] : memref<1x8x128xf32, #tpu.memory_space<vmem>>, vector<1x8x128xf32>
    tpu.vector_store %arg3[%c0_7, %c0_8, %c0_9], %24 {strides = array<i32>} : memref<1x8x128xf32, #tpu.memory_space<vmem>>, vector<1x8x128xf32>,
    %c0_i32_10 = arith.constant 0 : i32
    %26 = arith.cmpi sgt, %arg1, %c0_i32_10 : i32
    %c63_i32 = arith.constant 63 : i32
    %27 = arith.cmpi slt, %2, %c63_i32 : i32
    %28 = arith.andi %26, %27 : i1
    %29 = arith.extui %28 : i1 to i32
    %c0_i32_11 = arith.constant 0 : i32
    %30 = arith.cmpi ne, %29, %c0_i32_11 : i32
    scf.if %30 {
      %33 = vector.extract_strided_slice %7 {offsets = [0, 0], sizes = [1, 128], strides = [1, 1]} : vector<32x128xf32> to vector<1x128xf32>
      %c0_14 = arith.constant 0 : index
      %c0_15 = arith.constant 0 : index
      %34 = vector.load %arg4[%c0_14, %c0_15] : memref<1x128xf32, #tpu.memory_space<vmem>>, vector<1x128xf32>
      %35 = arith.subf %33, %34 : vector<1x128xf32>
      %c0_16 = arith.constant 0 : index
      %c0_17 = arith.constant 0 : index
      %c0_18 = arith.constant 0 : index
      %36 = vector.load %arg3[%c0_16, %c0_17, %c0_18] : memref<1x8x128xf32, #tpu.memory_space<vmem>>, vector<1x1x128xf32>
      %37 = arith.mulf %35, %35 : vector<1x128xf32>
      %38 = vector.shape_cast %37 : vector<1x128xf32> to vector<1x1x128xf32>
      %39 = arith.addf %36, %38 : vector<1x1x128xf32>
      %c0_19 = arith.constant 0 : index
      %c0_20 = arith.constant 0 : index
      %c0_21 = arith.constant 0 : index
      %40 = vector.load %arg3[%c0_19, %c0_20, %c0_21] : memref<1x8x128xf32, #tpu.memory_space<vmem>>, vector<1x1x128xf32>
      tpu.vector_store %arg3[%c0_19, %c0_20, %c0_21], %39 {strides = array<i32>} : memref<1x8x128xf32, #tpu.memory_space<vmem>>, vector<1x1x128xf32>,
    } else {
    }
    %31 = vector.extract_strided_slice %6 {offsets = [31, 0], sizes = [1, 128], strides = [1, 1]} : vector<32x128xf32> to vector<1x128xf32>
    %c0_12 = arith.constant 0 : index
    %c0_13 = arith.constant 0 : index
    %32 = vector.load %arg4[%c0_12, %c0_13] : memref<1x128xf32, #tpu.memory_space<vmem>>, vector<1x128xf32>
    tpu.vector_store %arg4[%c0_12, %c0_13], %31 {strides = array<i32>} : memref<1x128xf32, #tpu.memory_space<vmem>>, vector<1x128xf32>,
    return
  }
  func.func @transform_0(%arg0: i32, %arg1: i32) -> (i32, i32) {
    %c1_i32 = arith.constant 1 : i32
    %0 = arith.muli %arg0, %c1_i32 : i32
    %1 = arith.addi %0, %arg1 : i32
    %c1_i32_0 = arith.constant 1 : i32
    %2 = arith.minsi %1, %c1_i32_0 : i32
    %c0_i32 = arith.constant 0 : i32
    %c0_i32_1 = arith.constant 0 : i32
    return %2, %c0_i32 : i32, i32
  }
  func.func @transform_1(%arg0: i32, %arg1: i32) -> (i32, i32, i32) {
    %c0_i32 = arith.constant 0 : i32
    %c0_i32_0 = arith.constant 0 : i32
    %c0_i32_1 = arith.constant 0 : i32
    return %arg0, %c0_i32, %c0_i32_0 : i32, i32, i32
  }
}

</mosaic_0001>

<bundles_post_ra>
// kernel: tpu_custom_call.1
= control target key start
LH: loop header
LB: loop body
LE: loop exit
PB: predicated region body
PF: predicated region fallthrough
CT: control target
= control target key end

     0   :  { %6 = vsyncpa [#allocation4], 0  ;;  %s746_s0 = inlined_call_operand.hbm [shape: f32[64,128], index: 0, kind: input, shape index: {}]   ;;  %s747_s1 = inlined_call_operand.hbm [shape: f32[2,8,128], index: 1, kind: output, shape index: {}]  }
   0x1   :  { %8 = vsyncpa [#allocation4 + $0x1], 0 }
   0x2   :  { %9 = vsyncpa [#allocation5], 0 }
   0x3   :  { %11 = vsyncpa [#allocation5 + $0x1], 0  ;;  %s593_s6 = smov 0   ;;  %s595_s7 = smov 0  }
   0x4   :  { %s597_s8 = smov 0   ;;  %s599_s9 = smov 0  }
   0x5   :  { %s601_s10 = smov 0   ;;  %s603_s11 = smov 0  }
   0x6   :  { %s605_s12 = smov 0   ;;  %s607_s13 = smov 0  }
   0x7   :  { %s609_s14 = smov 0  }
   0x8 LB: > { %s336_s15 = sadd.s32 4294967295, %s578_s14   ;;  %s337_s16 = sadd.s32 4294967294, %s578_s14   ;;  %s578_s14 = sphi %s609_s14, %s17_s14   ;;  %s574_s13 = sphi %s607_s13, %s759_s13   ;;  %s570_s12 = sphi %s605_s12, %s758_s12   ;;  %s566_s11 = sphi %s603_s11, %s757_s11   ;;  %s562_s10 = sphi %s601_s10, %s756_s10   ;;  %s558_s9 = sphi %s599_s9, %s755_s9   ;;  %s554_s8 = sphi %s597_s8, %s754_s8   ;;  %s550_s7 = sphi %s595_s7, %s753_s7   ;;  %s546_s6 = sphi %s593_s6, %s752_s6  }
   0x9   : > { %s29_s17 = sadd.s32 1, %s574_s13  ;;  %p34_p0 = scmp.lt.s32.totalorder %s574_s13, 1 }
   0xa   : > { %p31_p1 = scmp.ge.s32.totalorder %s29_s17, 2  ;;  %s42_s18 = sadd.s32 1, %s566_s11 }
   0xb   : > { %s642_s19 = scalar_select %p34_p0, %s574_s13, 1 }
   0xc   : > { %s761_s17 = smov (%p31_p1, %s29_s17), 0  ;;  %p49_p2 = scmp.ne.s32.totalorder %s566_s11, %s562_s10 }
   0xd   : > { %p50_p3 = scmp.eq.s32.totalorder %s578_s14, 0  ;;  %p37_p4 = scmp.lt.s32.totalorder %s761_s17, 1 }
   0xe   : > { %p55_p5 = scmp.ne.s32.totalorder %s562_s10, %s558_s9  ;;  %p56_p7 = scmp.eq.s32.totalorder %s336_s15, 0 }
   0xf   : > { %p651_p6 = por %p50_p3, %p49_p2  ;;  %s65_s23 = ssub.s32 %s574_s13, %s761_s17 }
  0x10   : > { %s38_s21 = scalar_select %p37_p4, %s761_s17, 1 }
  0x11   : > { %p656_p8 = por %p56_p7, %p55_p5  ;;  %p66_p9 = scmp.eq.s32.totalorder %s65_s23, 0 }
  0x12   : > { %s39_s24 = ssub.s32 %s642_s19, %s38_s21  ;;  %s68_s25 = sadd.s32 1, %s554_s8 }
  0x13   : > { %p40_p10 = scmp.eq.s32.totalorder %s39_s24, 0  ;;  %p78_p11 = scmp.ne.s32.totalorder %s554_s8, %s550_s7 }
  0x14   : > { %s665_s26 = scalar_select %p66_p9, %s554_s8, %s68_s25  }
  0x15   : > { %s668_s27 = scalar_select %p40_p10, %s566_s11, %s42_s18  }
  0x16   : > { %p79_p12 = scmp.eq.s32.totalorder %s336_s15, 1  ;;  %p84_p13 = scmp.ne.s32.totalorder %s550_s7, %s546_s6 }
  0x17   : > { %p85_p0 = scmp.eq.s32.totalorder %s337_s16, 1  ;;  %p339_p2 = scmp.ge.s32.totalorder %s578_s14, 2 }
  0x18   : > { %p674_p1 = por %p79_p12, %p78_p11  ;;  %p364_p4 = scmp.lt.s32.totalorder %s578_s14, 2 }
  0x19   : > { %p679_p3 = por %p85_p0, %p84_p13  ;;  %s105_s30 = sand.u32 1, %s566_s11  }
  0x1a   : > { %s351_s2 = sshll.u32 %s642_s19, 5  ;;  %s340_s3 = sshll.u32 %s105_s30, 5 }
  0x1b   : > { %s117_s9 = scalar_lea.hbm %s746_s0, %s351_s2  ;;  %s109_s16 = scalar_lea.vmem [#allocation3], %s340_s3 }
  0x1c   : > { %s118_s15 = sshll.u32 %s117_s9, 4  ;;  %s120_s18 = sshll.u32 %s109_s16, 4  ;;  %s119_s15 = int_to_ptr.hbm [resolvable:$true] %s118_s15  ;;  %s121_s18 = int_to_ptr.vmem [resolvable:$true] %s120_s18 }
  0x1d   : > { %p357_p5 = pnand %p364_p4, %p651_p6  ;;  %p343_p7 = scmp.ge.s32.totalorder %s578_s14, 1 }
  0x1e   : > { %p128_p9 = scmp.lt.s32.totalorder %s578_s14, 3  ;;  %s106_s21 = scalar_lea.sflag [#allocation4], %s105_s30 }
  0x1f   : > { %s580_s23 = smov 128   ;;  %s581_s24 = smov 8  }
  0x20   : > { %359 = dma.hbm_to_vmem [thread:$0]  (!%p357_p5), %s119_s15, 512, %s121_s18, %s106_s21, %s580_s23, %s580_s23, %s581_s24  }
  0x21   : > { %p129_p10 = pnand %p343_p7, %p128_p9 }
  0x22   : > { %s134_s19 = sand.u32 (!%p129_p10), 1, %s562_s10  }
  0x23   : > { %132 = sbr.rel (%p129_p10) target bundleno = 182 (0xb6), region = 24  ;;  %s344_s25 = sshll.u32 (!%p129_p10), %s134_s19, 5 }
  0x24   : > { %s135_s2 = scalar_lea.sflag (!%p129_p10), [#allocation4], %s134_s19  ;;  %s138_s4 = scalar_lea.vmem (!%p129_p10), [#allocation3], %s344_s25 }
  0x28   : > { %537 = dma.done.wait (%p656_p8), %s135_s2, 512  }
  0x29   : > { %539 = vsyncadd (%p656_p8), %s135_s2, 4294966784  ;;  %v171_v0 = vld [vmem:[%s138_s4 + $0x10] sm:$0xff]  ;;  %v169_v1 = vld [vmem:[%s138_s4] sm:$0xff]  ;;  %s582_s20 = smov 126   ;;  %s346_s30 = sshll.u32 %s570_s12, 5  ;;  %v185_v4 = vlaneseq }
  0x2a   : > { %v172_v2 = vld [vmem:[%s138_s4 + $0x18] sm:$0xff]  ;;  %177 = vrot.lane.b32.xlu1 %v171_v0, %s582_s20  ;;  %173 = vrot.lane.b32.xlu0 %v169_v1, %s582_s20  ;;  %v170_v3 = vld [vmem:[%s138_s4 + $0x8] sm:$0xff]  ;;  %s192_s3 = ssub.s32 62, %s346_s30  ;;  %s155_s22 = sand.u32 1, %s550_s7  }
  0x2b   : > { %p193_p6 = scmp.lt.s32.totalorder %s192_s3, 31  ;;  %v186_v7 = vshrl.u32 %v185_v4, 7  ;;  %s345_s5 = sshll.u32 %s155_s22, 3 }
  0x2c   : > { %s348_s9 = sshll.u32 %s570_s12, 3  ;;  %s157_s21 = scalar_lea.vmem [#allocation6], %s345_s5 }
  0x2d   : > { %s763_s3 = smov (!%p193_p6, %s192_s3), 31  ;;  %v196_v8 = vadd.s32 16, %v186_v7  ;;  %v195_v9 = vadd.s32 8, %v186_v7  ;;  %vm187_vm0 = vcmp.lt.s32.totalorder %v186_v7, 7  ;;  %v197_v11 = vadd.s32 24, %v186_v7  ;;  %s253_s18 = scalar_lea.hbm %s747_s1, %s348_s9 }
  0x2e   : > { %v198_v10 = vstv %s763_s3  ;;  %s255_s23 = sshll.u32 %s157_s21, 4  ;;  %s257_s24 = sshll.u32 %s253_s18, 4  ;;  %s256_s23 = int_to_ptr.vmem [resolvable:$true] %s255_s23  ;;  %s258_s24 = int_to_ptr.hbm [resolvable:$true] %s257_s24 }
  0x2f   : > { %vm201_vm1 = vcmp.lt.s32.totalorder %v196_v8, %v198_v10  ;;  %vm199_vm2 = vcmp.lt.s32.totalorder %v186_v7, %v198_v10  ;;  %vm200_vm3 = vcmp.lt.s32.totalorder %v195_v9, %v198_v10  ;;  %vm202_vm4 = vcmp.lt.s32.totalorder %v197_v11, %v198_v10  ;;  %s243_s12 = scalar_lea.sflag [#allocation5], %s155_s22  ;;  %s486_s19 = sshra.s32 %s258_s24, 4  ;;  %s487_s19 = int_to_ptr.hbm [resolvable:$true] %s486_s19 }
  0x30   : > { %s488_s25 = scalar_lea.hbm %s487_s19, 8  ;;  %p493_p13 = scmp.lt.s32.totalorder %s487_s19, %s747_s1 }
  0x31   : > { %p489_p8 = scmp.ne.s32.totalorder %s487_s19, %s488_s25 }
  0x32   : > { %179 = vrot.lane.b32.xlu1 %v172_v2, %s582_s20  ;;  %175 = vrot.lane.b32.xlu0 %v170_v3, %s582_s20  ;;  %s492_s20 = scalar_lea.hbm %s747_s1, 16 }
  0x33   : > { %p490_p11 = pnand %p489_p8, %p674_p1  ;;  %p494_p0 = scmp.lt.s32.totalorder %s492_s20, %s488_s25 }
  0x35   : > { %p491_p12 = pneg %p490_p11  ;;  %p495_p4 = por %p494_p0, %p493_p13 }
  0x37   : > { %p496_p5 = pnand %p495_p4, %p491_p12 }
  0x9c   : > { %v178_v5 = vpop.permute.xlu1 %177  ;;  %v174_v6 = vpop.permute.xlu0 %173 }
  0x9d   : > { %v183_v14 = vrot.slane %v178_v5, 1  ;;  %v181_v15 = vrot.slane %v174_v6, 1 }
  0xa4   : > { %v180_v12 = vpop.permute.xlu1 %179  ;;  %v176_v13 = vpop.permute.xlu0 %175 }
  0xa5   : > { %v184_v16 = vrot.slane %v180_v12, 1  ;;  %v182_v17 = vrot.slane %v176_v13, 1 }
  0xa7   : > { %v188_v18 = vsel %vm187_vm0, %v183_v14, %v184_v16  ;;  %v191_v19 = vsel %vm187_vm0, %v184_v16, %v181_v15  ;;  %v189_v20 = vsel %vm187_vm0, %v182_v17, %v183_v14  ;;  %v190_v21 = vsel %vm187_vm0, %v181_v15, %v182_v17 }
  0xa8   : > { %v205_v22 = vsub.f32 %v188_v18, %v171_v0  ;;  %v206_v23 = vsub.f32 %v191_v19, %v172_v2  ;;  %v203_v24 = vsub.f32 %v190_v21, %v169_v1  ;;  %v204_v25 = vsub.f32 %v189_v20, %v170_v3 }
  0xaa   : > { %v217_v26 = vsel %vm201_vm1, %v205_v22, 0.0  ;;  %v215_v27 = vsel %vm199_vm2, %v203_v24, 0.0  ;;  %v216_v28 = vsel %vm200_vm3, %v204_v25, 0.0  ;;  %v218_v31 = vsel %vm202_vm4, %v206_v23, 0.0 }
  0xab   : > { %v219_v29 = vmul.f32 %v215_v27, %v215_v27  ;;  %v220_v30 = vmul.f32 %v216_v28, %v216_v28  ;;  %v221_v32 = vmul.f32 %v217_v26, %v217_v26  ;;  %v222_v34 = vmul.f32 %v218_v31, %v218_v31 }
  0xad   : > { %v224_v33 = vadd.f32 %v220_v30, %v219_v29 }
  0xaf   : > { %v225_v35 = vadd.f32 %v224_v33, %v221_v32 }
  0xb1   : > { %v226_v36 = vadd.f32 %v225_v35, %v222_v34 }
  0xb3   : > { %228 = vst [vmem:[%s157_s21] sm:$0xff] %v226_v36 }
  0xb4   : > { %499 = shalt.err (!%p496_p5)
}
  0xb5   : > { %354 = dma.vmem_to_hbm [thread:$0]  (%p674_p1), %s256_s23, 128, %s258_s24, %s243_s12  }
  0xb6 PF: > { %s269_s22 = sand.u32 1, %s546_s6   ;;  %p361_p7 = pnand %p339_p2, %p679_p3 }
  0xb7   : > { %s270_s5 = scalar_lea.sflag [#allocation5], %s269_s22 }
  0xb8   : > { %p362_p9 = pneg %p361_p7 }
  0xba   : > { %541 = dma.done.wait (%p362_p9), %s270_s5, 128  }
  0xbb   : > { %543 = vsyncadd (%p362_p9), %s270_s5, 4294967168  ;;  %s17_s14 = sadd.s32 1, %s578_s14   ;;  %s752_s6 = smov %s550_s7 }
  0xbc   : > { %p14_p10 = scmp.ge.s32.totalorder %s17_s14, 4   ;;  %s753_s7 = smov %s554_s8 }
  0xbd   : > { %s754_s8 = smov %s665_s26  ;;  %s755_s9 = smov %s562_s10 }
  0xbe   : > { %s756_s10 = smov %s566_s11  ;;  %s757_s11 = smov %s668_s27 }
  0xbf   : > { %s758_s12 = smov %s574_s13  ;;  %s759_s13 = smov %s761_s17 }
  0xc0   :  { %16 = sbr.rel (!%p14_p10) target bundleno = 8 (0x8), region = 77 }
  0xc5   :  { %276 = vsyncpa [#allocation4], 1 }
  0xc6   :  { %278 = vsyncpa [#allocation4 + $0x1], 1 }
  0xc7   :  { %279 = vsyncpa [#allocation5], 1 }
  0xc8   :  { %281 = vsyncpa [#allocation5 + $0x1], 1 }

</bundles_post_ra>
